<compile_context>
chip_gen: v7x
topology: tpu7x:2x2x1
jax: 0.10.0
libtpu: 0.0.40
codegen_flags: <defaults>
</compile_context>

<pallas_src>
import jax
import jax.numpy as jnp
from jax.experimental import pallas as pl
from jax.experimental.pallas import tpu as pltpu  # noqa: F401  (TPU-specific params if scaled up)


def _round_up(n, m):
    return -(-n // m) * m


# ----------------------------- fused Pallas kernel ------------------------------

def _make_fused_kernel(num_layers, seq_len, batch, batch_pad, hidden, out_dim,
                       layer_offs, head_offs):
    """Build the fused (stacked-LSTM + Linear head) kernel body.

    Refs:
      x_ref : (T*BP, Dp)  time-major input, batch padded to BP (multiple of 8),
                          feature dim padded to Dp (multiple of 8).
      w_ref : (R, 4H)     packed parameter slab: per layer [W_ih^T ; W_hh^T ; bias row],
                          then [lin_W^T ; lin_b row] (head padded out to 4H columns).
      y_ref : (B, O)      output = Linear(lstm_out[-1]).
    """
    T, B, BP, H, O = seq_len, batch, batch_pad, hidden, out_dim
    G = 4 * H
    off_lin_w, off_lin_b = head_offs

    def kernel(x_ref, w_ref, y_ref):
        # Loop-invariant lane masks for the [i|f|g|o] gate layout (computed once).
        lane = jax.lax.broadcasted_iota(jnp.int32, (BP, G), 1)
        is_g = jnp.logical_and(lane >= 2 * H, lane < 3 * H)
        # sigmoid(x) = 0.5 * (1 + tanh(x/2)): pre-scale non-g lanes by 0.5.
        pre_scale = jnp.where(is_g, 1.0, 0.5)

        # Layer-0 input projection hoisted out of the recurrence: ONE MXU matmul over
        # all T steps + the (b_ih + b_hh) bias row. Kept f32 (off the critical path).
        # NOTE: at large H/T/B this (T*BP, 4H) resident would need tiling over T
        # (64 MiB VMEM on v7x); at this size it is ~32 KB.
        off_wih0, rows_wih0, _, off_b0 = layer_offs[0]
        gx = (jnp.dot(x_ref[...], w_ref[off_wih0:off_wih0 + rows_wih0, :],
                      preferred_element_type=jnp.float32)
              + w_ref[off_b0:off_b0 + 1, :])                       # (T*BP, 4H)
        # 8-aligned per-step slices (BP is a multiple of 8).
        gates_x_steps = [gx[t * BP:(t + 1) * BP, :] for t in range(T)]

        h = jnp.zeros((BP, H), jnp.float32)
        for l in range(num_layers):
            _, _, off_whh, _ = layer_offs[l]
            # Recurrent weight as bf16 (f32 accumulation below): single MXU pass per
            # step instead of the multi-pass f32xf32 lowering. Cast once per layer.
            whh = w_ref[off_whh:off_whh + H, :].astype(jnp.bfloat16)    # (H, 4H)
            last = (l == num_layers - 1)
            if not last:
                off_wih_n, rows_wih_n, _, off_b_n = layer_offs[l + 1]
                wih_next = w_ref[off_wih_n:off_wih_n + rows_wih_n, :]   # (H, 4H)
                b_next = w_ref[off_b_n:off_b_n + 1, :]
                next_steps = []

            h = jnp.zeros((BP, H), jnp.float32)
            c = jnp.zeros((BP, H), jnp.float32)
            # Serial recurrence, fully unrolled at trace time (T is static & small).
            for t in range(T):
                gates = gates_x_steps[t] + jnp.dot(
                    h.astype(jnp.bfloat16), whh,
                    preferred_element_type=jnp.float32)            # (BP, 4H)

                # One full-vreg tanh; sigmoid lanes recovered with cheap VPU ops.
                tg = jnp.tanh(gates * pre_scale)
                act = jnp.where(is_g, tg, 0.5 * tg + 0.5)
                i_g = act[:, 0 * H:1 * H]
                f_g = act[:, 1 * H:2 * H]
                g_g = act[:, 2 * H:3 * H]
                o_g = act[:, 3 * H:4 * H]

                c = f_g * c + i_g * g_g
                h = o_g * jnp.tanh(c)

                if not last:
                    # Next layer's input projection computed incrementally, off the
                    # h->h critical path (MXU has slack under the serial recurrence).
                    next_steps.append(
                        jnp.dot(h, wih_next, preferred_element_type=jnp.float32)
                        + b_next)
            if not last:
                gates_x_steps = next_steps

        # Linear head on lstm_out[-1]; the only HBM write of the whole forward pass.
        # Head weights were padded out to 4H columns (zeros), so slice [:O] at the end.
        y_full = (jnp.dot(h, w_ref[off_lin_w:off_lin_w + H, :],
                          preferred_element_type=jnp.float32)
                  + w_ref[off_lin_b:off_lin_b + 1, :])             # (BP, 4H)
        y_ref[...] = y_full[:B, :O].astype(y_ref.dtype)

    return kernel


# --------------------------- host-side parameter packing ------------------------

def _pack_params(lstm_params, lin_w, lin_b, hidden, d0_pad):
    """Pack every weight/bias into one (rows, 4H) f32 slab (one DMA, 8-aligned slices)."""
    G = 4 * hidden
    blocks = []
    layer_offs = []
    row = 0
    for l, (w_ih, w_hh, b_ih, b_hh) in enumerate(lstm_params):
        d_in = w_ih.shape[1]
        d_pad = d0_pad if l == 0 else d_in          # layer-0 rows match padded x features
        assert d_pad % 8 == 0
        wih_t = jnp.zeros((d_pad, G), jnp.float32).at[:d_in, :].set(
            jnp.asarray(w_ih, jnp.float32).T)                       # (d_pad, 4H)
        whh_t = jnp.asarray(w_hh, jnp.float32).T                    # (H, 4H)
        bias = jnp.zeros((8, G), jnp.float32).at[0, :].set(
            jnp.asarray(b_ih, jnp.float32) + jnp.asarray(b_hh, jnp.float32))
        off_wih = row; row += d_pad
        off_whh = row; row += hidden
        off_b = row;   row += 8
        layer_offs.append((off_wih, d_pad, off_whh, off_b))
        blocks += [wih_t, whh_t, bias]

    out_dim = lin_w.shape[0]
    assert out_dim <= G, "head packing assumes output_dim <= 4*hidden"
    lin_w_t = jnp.zeros((hidden, G), jnp.float32).at[:, :out_dim].set(
        jnp.asarray(lin_w, jnp.float32).T)                          # (H, 4H) zero-padded
    lin_b_r = jnp.zeros((8, G), jnp.float32).at[0, :out_dim].set(
        jnp.asarray(lin_b, jnp.float32))
    off_lin_w = row; row += hidden
    off_lin_b = row; row += 8
    blocks += [lin_w_t, lin_b_r]

    wpack = jnp.concatenate(blocks, axis=0)                          # (rows, 4H)
    return wpack, layer_offs, (off_lin_w, off_lin_b)


# ------------------------------ host wrapper -------------------------------

def lstm_model_forward(x, params):
    """Full module forward: stacked LSTM + Linear on last time step, flattened.

    x: (T, B, D) time-major (PyTorch nn.LSTM default batch_first=False).
    Returns shape (B * output_dim,) == y_pred.view(-1).
    """
    seq_len, batch, in_dim = x.shape
    lstm_params = params["lstm"]
    num_layers = len(lstm_params)
    hidden = lstm_params[0][1].shape[1]          # w_hh: (4H, H)
    assert hidden % 8 == 0, "hidden_dim must be a multiple of 8 for this packing"
    lin_w, lin_b = params["lin_w"], params["lin_b"]
    out_dim = lin_w.shape[0]

    batch_pad = _round_up(max(batch, 1), 8)      # sublane-align the batch dim
    d_pad = _round_up(max(in_dim, 1), 8)         # sublane-align layer-0 feature dim

    # Pad (T, B, D) -> (T, BP, Dp) with zeros, then flatten (T, BP) -> T*BP so the
    # hoisted input projection is one dense matmul and per-step slices are 8-aligned.
    x = jnp.asarray(x, jnp.float32)
    x_pad = jnp.zeros((seq_len, batch_pad, d_pad), jnp.float32)
    x_pad = x_pad.at[:, :batch, :in_dim].set(x)
    x2 = x_pad.reshape(seq_len * batch_pad, d_pad)

    wpack, layer_offs, head_offs = _pack_params(lstm_params, lin_w, lin_b, hidden, d_pad)

    kernel = _make_fused_kernel(num_layers, seq_len, batch, batch_pad, hidden, out_dim,
                                layer_offs, head_offs)

    y = pl.pallas_call(
        kernel,
        out_shape=jax.ShapeDtypeStruct((batch, out_dim), jnp.float32),
        in_specs=[
            pl.BlockSpec(x2.shape, lambda: (0, 0)),     # (T*BP, Dp)
            pl.BlockSpec(wpack.shape, lambda: (0, 0)),  # packed params, single DMA
        ],
        out_specs=pl.BlockSpec((batch, out_dim), lambda: (0, 0)),
        # Grid-less: single invocation, everything VMEM-resident (~tens of KB here).
        # Scaling notes (per review): at large H/T/B tile gates_x over T and set
        # vmem_limit_bytes (v7x: 64 MiB VMEM); add a parallel batch grid axis to use
        # v7x's second TensorCore; keep output last dim a multiple of 128 if O grows.
    )(x2, wpack)

    return y.reshape(-1)


# --------------------------- parameter construction -------------------------

def init_params(key, input_dim, hidden_dim, output_dim, num_layers):
    """Deterministic init mimicking PyTorch's U(-1/sqrt(H), 1/sqrt(H))."""
    k = 1.0 / jnp.sqrt(jnp.float32(hidden_dim))
    lstm_params = []
    for layer in range(num_layers):
        d_in = input_dim if layer == 0 else hidden_dim
        key, k1, k2, k3, k4 = jax.random.split(key, 5)
        w_ih = jax.random.uniform(k1, (4 * hidden_dim, d_in), jnp.float32, -k, k)
        w_hh = jax.random.uniform(k2, (4 * hidden_dim, hidden_dim), jnp.float32, -k, k)
        b_ih = jax.random.uniform(k3, (4 * hidden_dim,), jnp.float32, -k, k)
        b_hh = jax.random.uniform(k4, (4 * hidden_dim,), jnp.float32, -k, k)
        lstm_params.append((w_ih, w_hh, b_ih, b_hh))
    key, k5, k6 = jax.random.split(key, 3)
    lin_w = jax.random.uniform(k5, (output_dim, hidden_dim), jnp.float32, -k, k)
    lin_b = jax.random.uniform(k6, (output_dim,), jnp.float32, -k, k)
    return {"lstm": lstm_params, "lin_w": lin_w, "lin_b": lin_b}


# ------------------------------ pure-JAX reference ---------------------------

def _reference_forward(x, params, *, bf16_recurrent=False):
    """PyTorch-equivalent forward. bf16_recurrent=True mimics the kernel's bf16
    recurrent-matmul operands (f32 accumulation) for a tight structural check."""
    x = jnp.asarray(x, jnp.float32)

    def one_layer(xs, w_ih, w_hh, b_ih, b_hh):
        hidden = w_hh.shape[1]
        batch = xs.shape[1]
        w_ih_t = jnp.asarray(w_ih, jnp.float32).T
        w_hh_t = jnp.asarray(w_hh, jnp.float32).T
        bias = jnp.asarray(b_ih, jnp.float32) + jnp.asarray(b_hh, jnp.float32)
        if bf16_recurrent:
            w_hh_t = w_hh_t.astype(jnp.bfloat16)

        def step(carry, x_t):
            h, c = carry
            hh = h.astype(jnp.bfloat16) if bf16_recurrent else h
            gates = (x_t @ w_ih_t + bias
                     + jnp.dot(hh, w_hh_t, preferred_element_type=jnp.float32))
            i, f, g, o = jnp.split(gates, 4, axis=-1)
            c = jax.nn.sigmoid(f) * c + jax.nn.sigmoid(i) * jnp.tanh(g)
            h = jax.nn.sigmoid(o) * jnp.tanh(c)
            return (h, c), h

        h0 = jnp.zeros((batch, hidden), jnp.float32)
        c0 = jnp.zeros((batch, hidden), jnp.float32)
        (_, _), hs = jax.lax.scan(step, (h0, c0), xs)
        return hs

    h = x
    for lp in params["lstm"]:
        h = one_layer(h, *lp)
    y = (h[-1] @ jnp.asarray(params["lin_w"], jnp.float32).T
         + jnp.asarray(params["lin_b"], jnp.float32))
    return y.reshape(-1)


# ----------------------------------- main ------------------------------------

if __name__ == "__main__":
    SEQ_LEN = 8
    BATCH = 2
    INPUT_DIM = 4
    HIDDEN_DIM = 32
    OUTPUT_DIM = 1
    NUM_LAYERS = 1   # matches the module-level `num_layers = 1` in the source script

    key = jax.random.PRNGKey(0)
    key, pkey, xkey = jax.random.split(key, 3)
    params = init_params(pkey, INPUT_DIM, HIDDEN_DIM, OUTPUT_DIM, NUM_LAYERS)
    x = jax.random.normal(xkey, (SEQ_LEN, BATCH, INPUT_DIM), jnp.float32)

    y = jax.block_until_ready(lstm_model_forward(x, params))
    assert y.shape == (BATCH * OUTPUT_DIM,)

    # Structural check vs. a reference that matches the kernel's bf16 recurrent matmul.
    y_match = _reference_forward(x, params, bf16_recurrent=True)
    assert jnp.allclose(y, y_match, atol=5e-3, rtol=5e-3), (y, y_match)

    # Semantic check vs. the pure-f32 PyTorch-equivalent reference. bf16 operand
    # rounding on the recurrent matmul compounds over T steps -> loosened tolerance.
    y_ref = _reference_forward(x, params, bf16_recurrent=False)
    assert jnp.allclose(y, y_ref, atol=2e-2, rtol=2e-2), (y, y_ref)

    print("KERNEL_OK")
</pallas_src>

<mosaic_0001>
module attributes {stable_mosaic.version = 11 : i64} {
  func.func @kernel(%arg0: memref<64x8xf32, #tpu.memory_space<vmem>>, %arg1: memref<88x128xf32, #tpu.memory_space<vmem>>, %arg2: memref<2x1xf32, #tpu.memory_space<vmem>>) attributes {dimension_semantics = [], scalar_prefetch = 0 : i64, scratch_operands = 0 : i64, tpu.core_type = #tpu.core_type<tc>} {
    %0 = tpu.iota {dimensions = array<i32: 1>} : vector<8x128xi32>
    %c64_i32 = arith.constant 64 : i32
    %1 = vector.broadcast %c64_i32 : i32 to vector<8x128xi32>
    %2 = arith.cmpi sge, %0, %1 : vector<8x128xi32>
    %c96_i32 = arith.constant 96 : i32
    %3 = vector.broadcast %c96_i32 : i32 to vector<8x128xi32>
    %4 = arith.cmpi slt, %0, %3 : vector<8x128xi32>
    %5 = arith.andi %2, %4 : vector<8x128xi1>
    %cst = arith.constant 1.000000e+00 : f32
    %cst_0 = arith.constant 5.000000e-01 : f32
    %6 = vector.broadcast %cst : f32 to vector<8x128xf32>
    %7 = vector.broadcast %cst_0 : f32 to vector<8x128xf32>
    %8 = arith.select %5, %6, %7 : vector<8x128xi1>, vector<8x128xf32>
    %c0 = arith.constant 0 : index
    %c0_1 = arith.constant 0 : index
    %9 = vector.load %arg0[%c0, %c0_1] : memref<64x8xf32, #tpu.memory_space<vmem>>, vector<64x8xf32>
    %c0_2 = arith.constant 0 : index
    %c0_3 = arith.constant 0 : index
    %10 = vector.load %arg1[%c0_2, %c0_3] : memref<88x128xf32, #tpu.memory_space<vmem>>, vector<8x128xf32>
    %cst_4 = arith.constant dense<0.000000e+00> : vector<64x128xf32>
    %11 = tpu.matmul %9, %10, %cst_4 {dimension_numbers = #tpu.dot_dimension_numbers<[1], [0], [0], [1], [0, 0, 1, 1], [], []>} : vector<64x8xf32>, vector<8x128xf32>, vector<64x128xf32> -> vector<64x128xf32>
    %c40 = arith.constant 40 : index
    %c0_5 = arith.constant 0 : index
    %12 = vector.load %arg1[%c40, %c0_5] : memref<88x128xf32, #tpu.memory_space<vmem>>, vector<1x128xf32>
    %13 = vector.broadcast %12 : vector<1x128xf32> to vector<64x128xf32>
    %14 = arith.addf %11, %13 : vector<64x128xf32>
    %15 = vector.extract_strided_slice %14 {offsets = [0, 0], sizes = [8, 128], strides = [1, 1]} : vector<64x128xf32> to vector<8x128xf32>
    %16 = vector.extract_strided_slice %14 {offsets = [8, 0], sizes = [8, 128], strides = [1, 1]} : vector<64x128xf32> to vector<8x128xf32>
    %17 = vector.extract_strided_slice %14 {offsets = [16, 0], sizes = [8, 128], strides = [1, 1]} : vector<64x128xf32> to vector<8x128xf32>
    %18 = vector.extract_strided_slice %14 {offsets = [24, 0], sizes = [8, 128], strides = [1, 1]} : vector<64x128xf32> to vector<8x128xf32>
    %19 = vector.extract_strided_slice %14 {offsets = [32, 0], sizes = [8, 128], strides = [1, 1]} : vector<64x128xf32> to vector<8x128xf32>
    %20 = vector.extract_strided_slice %14 {offsets = [40, 0], sizes = [8, 128], strides = [1, 1]} : vector<64x128xf32> to vector<8x128xf32>
    %21 = vector.extract_strided_slice %14 {offsets = [48, 0], sizes = [8, 128], strides = [1, 1]} : vector<64x128xf32> to vector<8x128xf32>
    %22 = vector.extract_strided_slice %14 {offsets = [56, 0], sizes = [8, 128], strides = [1, 1]} : vector<64x128xf32> to vector<8x128xf32>
    %c8 = arith.constant 8 : index
    %c0_6 = arith.constant 0 : index
    %23 = vector.load %arg1[%c8, %c0_6] : memref<88x128xf32, #tpu.memory_space<vmem>>, vector<32x128xf32>
    %24 = arith.truncf %23 : vector<32x128xf32> to vector<32x128xbf16>
    %cst_7 = arith.constant 0.000000e+00 : f32
    %25 = vector.broadcast %cst_7 : f32 to vector<8x32xf32>
    %cst_8 = arith.constant 0.000000e+00 : f32
    %26 = vector.broadcast %cst_8 : f32 to vector<8x32xf32>
    %27 = arith.truncf %25 : vector<8x32xf32> to vector<8x32xbf16>
    %cst_9 = arith.constant dense<0.000000e+00> : vector<8x128xf32>
    %28 = tpu.matmul %27, %24, %cst_9 {dimension_numbers = #tpu.dot_dimension_numbers<[1], [0], [0], [1], [0, 0, 1, 1], [], []>} : vector<8x32xbf16>, vector<32x128xbf16>, vector<8x128xf32> -> vector<8x128xf32>
    %29 = arith.addf %15, %28 : vector<8x128xf32>
    %30 = arith.mulf %29, %8 : vector<8x128xf32>
    %31 = math.tanh %30 : vector<8x128xf32>
    %cst_10 = arith.constant 5.000000e-01 : f32
    %32 = vector.broadcast %cst_10 : f32 to vector<8x128xf32>
    %33 = arith.mulf %32, %31 : vector<8x128xf32>
    %cst_11 = arith.constant 5.000000e-01 : f32
    %34 = vector.broadcast %cst_11 : f32 to vector<8x128xf32>
    %35 = arith.addf %33, %34 : vector<8x128xf32>
    %36 = arith.select %5, %31, %35 : vector<8x128xi1>, vector<8x128xf32>
    %37 = vector.extract_strided_slice %36 {offsets = [0, 0], sizes = [8, 32], strides = [1, 1]} : vector<8x128xf32> to vector<8x32xf32>
    %38 = vector.extract_strided_slice %36 {offsets = [0, 32], sizes = [8, 32], strides = [1, 1]} : vector<8x128xf32> to vector<8x32xf32>
    %39 = vector.extract_strided_slice %36 {offsets = [0, 64], sizes = [8, 32], strides = [1, 1]} : vector<8x128xf32> to vector<8x32xf32>
    %40 = vector.extract_strided_slice %36 {offsets = [0, 96], sizes = [8, 32], strides = [1, 1]} : vector<8x128xf32> to vector<8x32xf32>
    %41 = arith.mulf %38, %26 : vector<8x32xf32>
    %42 = arith.mulf %37, %39 : vector<8x32xf32>
    %43 = arith.addf %41, %42 : vector<8x32xf32>
    %44 = math.tanh %43 : vector<8x32xf32>
    %45 = arith.mulf %40, %44 : vector<8x32xf32>
    %46 = arith.truncf %45 : vector<8x32xf32> to vector<8x32xbf16>
    %cst_12 = arith.constant dense<0.000000e+00> : vector<8x128xf32>
    %47 = tpu.matmul %46, %24, %cst_12 {dimension_numbers = #tpu.dot_dimension_numbers<[1], [0], [0], [1], [0, 0, 1, 1], [], []>} : vector<8x32xbf16>, vector<32x128xbf16>, vector<8x128xf32> -> vector<8x128xf32>
    %48 = arith.addf %16, %47 : vector<8x128xf32>
    %49 = arith.mulf %48, %8 : vector<8x128xf32>
    %50 = math.tanh %49 : vector<8x128xf32>
    %cst_13 = arith.constant 5.000000e-01 : f32
    %51 = vector.broadcast %cst_13 : f32 to vector<8x128xf32>
    %52 = arith.mulf %51, %50 : vector<8x128xf32>
    %cst_14 = arith.constant 5.000000e-01 : f32
    %53 = vector.broadcast %cst_14 : f32 to vector<8x128xf32>
    %54 = arith.addf %52, %53 : vector<8x128xf32>
    %55 = arith.select %5, %50, %54 : vector<8x128xi1>, vector<8x128xf32>
    %56 = vector.extract_strided_slice %55 {offsets = [0, 0], sizes = [8, 32], strides = [1, 1]} : vector<8x128xf32> to vector<8x32xf32>
    %57 = vector.extract_strided_slice %55 {offsets = [0, 32], sizes = [8, 32], strides = [1, 1]} : vector<8x128xf32> to vector<8x32xf32>
    %58 = vector.extract_strided_slice %55 {offsets = [0, 64], sizes = [8, 32], strides = [1, 1]} : vector<8x128xf32> to vector<8x32xf32>
    %59 = vector.extract_strided_slice %55 {offsets = [0, 96], sizes = [8, 32], strides = [1, 1]} : vector<8x128xf32> to vector<8x32xf32>
    %60 = arith.mulf %57, %43 : vector<8x32xf32>
    %61 = arith.mulf %56, %58 : vector<8x32xf32>
    %62 = arith.addf %60, %61 : vector<8x32xf32>
    %63 = math.tanh %62 : vector<8x32xf32>
    %64 = arith.mulf %59, %63 : vector<8x32xf32>
    %65 = arith.truncf %64 : vector<8x32xf32> to vector<8x32xbf16>
    %cst_15 = arith.constant dense<0.000000e+00> : vector<8x128xf32>
    %66 = tpu.matmul %65, %24, %cst_15 {dimension_numbers = #tpu.dot_dimension_numbers<[1], [0], [0], [1], [0, 0, 1, 1], [], []>} : vector<8x32xbf16>, vector<32x128xbf16>, vector<8x128xf32> -> vector<8x128xf32>
    %67 = arith.addf %17, %66 : vector<8x128xf32>
    %68 = arith.mulf %67, %8 : vector<8x128xf32>
    %69 = math.tanh %68 : vector<8x128xf32>
    %cst_16 = arith.constant 5.000000e-01 : f32
    %70 = vector.broadcast %cst_16 : f32 to vector<8x128xf32>
    %71 = arith.mulf %70, %69 : vector<8x128xf32>
    %cst_17 = arith.constant 5.000000e-01 : f32
    %72 = vector.broadcast %cst_17 : f32 to vector<8x128xf32>
    %73 = arith.addf %71, %72 : vector<8x128xf32>
    %74 = arith.select %5, %69, %73 : vector<8x128xi1>, vector<8x128xf32>
    %75 = vector.extract_strided_slice %74 {offsets = [0, 0], sizes = [8, 32], strides = [1, 1]} : vector<8x128xf32> to vector<8x32xf32>
    %76 = vector.extract_strided_slice %74 {offsets = [0, 32], sizes = [8, 32], strides = [1, 1]} : vector<8x128xf32> to vector<8x32xf32>
    %77 = vector.extract_strided_slice %74 {offsets = [0, 64], sizes = [8, 32], strides = [1, 1]} : vector<8x128xf32> to vector<8x32xf32>
    %78 = vector.extract_strided_slice %74 {offsets = [0, 96], sizes = [8, 32], strides = [1, 1]} : vector<8x128xf32> to vector<8x32xf32>
    %79 = arith.mulf %76, %62 : vector<8x32xf32>
    %80 = arith.mulf %75, %77 : vector<8x32xf32>
    %81 = arith.addf %79, %80 : vector<8x32xf32>
    %82 = math.tanh %81 : vector<8x32xf32>
    %83 = arith.mulf %78, %82 : vector<8x32xf32>
    %84 = arith.truncf %83 : vector<8x32xf32> to vector<8x32xbf16>
    %cst_18 = arith.constant dense<0.000000e+00> : vector<8x128xf32>
    %85 = tpu.matmul %84, %24, %cst_18 {dimension_numbers = #tpu.dot_dimension_numbers<[1], [0], [0], [1], [0, 0, 1, 1], [], []>} : vector<8x32xbf16>, vector<32x128xbf16>, vector<8x128xf32> -> vector<8x128xf32>
    %86 = arith.addf %18, %85 : vector<8x128xf32>
    %87 = arith.mulf %86, %8 : vector<8x128xf32>
    %88 = math.tanh %87 : vector<8x128xf32>
    %cst_19 = arith.constant 5.000000e-01 : f32
    %89 = vector.broadcast %cst_19 : f32 to vector<8x128xf32>
    %90 = arith.mulf %89, %88 : vector<8x128xf32>
    %cst_20 = arith.constant 5.000000e-01 : f32
    %91 = vector.broadcast %cst_20 : f32 to vector<8x128xf32>
    %92 = arith.addf %90, %91 : vector<8x128xf32>
    %93 = arith.select %5, %88, %92 : vector<8x128xi1>, vector<8x128xf32>
    %94 = vector.extract_strided_slice %93 {offsets = [0, 0], sizes = [8, 32], strides = [1, 1]} : vector<8x128xf32> to vector<8x32xf32>
    %95 = vector.extract_strided_slice %93 {offsets = [0, 32], sizes = [8, 32], strides = [1, 1]} : vector<8x128xf32> to vector<8x32xf32>
    %96 = vector.extract_strided_slice %93 {offsets = [0, 64], sizes = [8, 32], strides = [1, 1]} : vector<8x128xf32> to vector<8x32xf32>
    %97 = vector.extract_strided_slice %93 {offsets = [0, 96], sizes = [8, 32], strides = [1, 1]} : vector<8x128xf32> to vector<8x32xf32>
    %98 = arith.mulf %95, %81 : vector<8x32xf32>
    %99 = arith.mulf %94, %96 : vector<8x32xf32>
    %100 = arith.addf %98, %99 : vector<8x32xf32>
    %101 = math.tanh %100 : vector<8x32xf32>
    %102 = arith.mulf %97, %101 : vector<8x32xf32>
    %103 = arith.truncf %102 : vector<8x32xf32> to vector<8x32xbf16>
    %cst_21 = arith.constant dense<0.000000e+00> : vector<8x128xf32>
    %104 = tpu.matmul %103, %24, %cst_21 {dimension_numbers = #tpu.dot_dimension_numbers<[1], [0], [0], [1], [0, 0, 1, 1], [], []>} : vector<8x32xbf16>, vector<32x128xbf16>, vector<8x128xf32> -> vector<8x128xf32>
    %105 = arith.addf %19, %104 : vector<8x128xf32>
    %106 = arith.mulf %105, %8 : vector<8x128xf32>
    %107 = math.tanh %106 : vector<8x128xf32>
    %cst_22 = arith.constant 5.000000e-01 : f32
    %108 = vector.broadcast %cst_22 : f32 to vector<8x128xf32>
    %109 = arith.mulf %108, %107 : vector<8x128xf32>
    %cst_23 = arith.constant 5.000000e-01 : f32
    %110 = vector.broadcast %cst_23 : f32 to vector<8x128xf32>
    %111 = arith.addf %109, %110 : vector<8x128xf32>
    %112 = arith.select %5, %107, %111 : vector<8x128xi1>, vector<8x128xf32>
    %113 = vector.extract_strided_slice %112 {offsets = [0, 0], sizes = [8, 32], strides = [1, 1]} : vector<8x128xf32> to vector<8x32xf32>
    %114 = vector.extract_strided_slice %112 {offsets = [0, 32], sizes = [8, 32], strides = [1, 1]} : vector<8x128xf32> to vector<8x32xf32>
    %115 = vector.extract_strided_slice %112 {offsets = [0, 64], sizes = [8, 32], strides = [1, 1]} : vector<8x128xf32> to vector<8x32xf32>
    %116 = vector.extract_strided_slice %112 {offsets = [0, 96], sizes = [8, 32], strides = [1, 1]} : vector<8x128xf32> to vector<8x32xf32>
    %117 = arith.mulf %114, %100 : vector<8x32xf32>
    %118 = arith.mulf %113, %115 : vector<8x32xf32>
    %119 = arith.addf %117, %118 : vector<8x32xf32>
    %120 = math.tanh %119 : vector<8x32xf32>
    %121 = arith.mulf %116, %120 : vector<8x32xf32>
    %122 = arith.truncf %121 : vector<8x32xf32> to vector<8x32xbf16>
    %cst_24 = arith.constant dense<0.000000e+00> : vector<8x128xf32>
    %123 = tpu.matmul %122, %24, %cst_24 {dimension_numbers = #tpu.dot_dimension_numbers<[1], [0], [0], [1], [0, 0, 1, 1], [], []>} : vector<8x32xbf16>, vector<32x128xbf16>, vector<8x128xf32> -> vector<8x128xf32>
    %124 = arith.addf %20, %123 : vector<8x128xf32>
    %125 = arith.mulf %124, %8 : vector<8x128xf32>
    %126 = math.tanh %125 : vector<8x128xf32>
    %cst_25 = arith.constant 5.000000e-01 : f32
    %127 = vector.broadcast %cst_25 : f32 to vector<8x128xf32>
    %128 = arith.mulf %127, %126 : vector<8x128xf32>
    %cst_26 = arith.constant 5.000000e-01 : f32
    %129 = vector.broadcast %cst_26 : f32 to vector<8x128xf32>
    %130 = arith.addf %128, %129 : vector<8x128xf32>
    %131 = arith.select %5, %126, %130 : vector<8x128xi1>, vector<8x128xf32>
    %132 = vector.extract_strided_slice %131 {offsets = [0, 0], sizes = [8, 32], strides = [1, 1]} : vector<8x128xf32> to vector<8x32xf32>
    %133 = vector.extract_strided_slice %131 {offsets = [0, 32], sizes = [8, 32], strides = [1, 1]} : vector<8x128xf32> to vector<8x32xf32>
    %134 = vector.extract_strided_slice %131 {offsets = [0, 64], sizes = [8, 32], strides = [1, 1]} : vector<8x128xf32> to vector<8x32xf32>
    %135 = vector.extract_strided_slice %131 {offsets = [0, 96], sizes = [8, 32], strides = [1, 1]} : vector<8x128xf32> to vector<8x32xf32>
    %136 = arith.mulf %133, %119 : vector<8x32xf32>
    %137 = arith.mulf %132, %134 : vector<8x32xf32>
    %138 = arith.addf %136, %137 : vector<8x32xf32>
    %139 = math.tanh %138 : vector<8x32xf32>
    %140 = arith.mulf %135, %139 : vector<8x32xf32>
    %141 = arith.truncf %140 : vector<8x32xf32> to vector<8x32xbf16>
    %cst_27 = arith.constant dense<0.000000e+00> : vector<8x128xf32>
    %142 = tpu.matmul %141, %24, %cst_27 {dimension_numbers = #tpu.dot_dimension_numbers<[1], [0], [0], [1], [0, 0, 1, 1], [], []>} : vector<8x32xbf16>, vector<32x128xbf16>, vector<8x128xf32> -> vector<8x128xf32>
    %143 = arith.addf %21, %142 : vector<8x128xf32>
    %144 = arith.mulf %143, %8 : vector<8x128xf32>
    %145 = math.tanh %144 : vector<8x128xf32>
    %cst_28 = arith.constant 5.000000e-01 : f32
    %146 = vector.broadcast %cst_28 : f32 to vector<8x128xf32>
    %147 = arith.mulf %146, %145 : vector<8x128xf32>
    %cst_29 = arith.constant 5.000000e-01 : f32
    %148 = vector.broadcast %cst_29 : f32 to vector<8x128xf32>
    %149 = arith.addf %147, %148 : vector<8x128xf32>
    %150 = arith.select %5, %145, %149 : vector<8x128xi1>, vector<8x128xf32>
    %151 = vector.extract_strided_slice %150 {offsets = [0, 0], sizes = [8, 32], strides = [1, 1]} : vector<8x128xf32> to vector<8x32xf32>
    %152 = vector.extract_strided_slice %150 {offsets = [0, 32], sizes = [8, 32], strides = [1, 1]} : vector<8x128xf32> to vector<8x32xf32>
    %153 = vector.extract_strided_slice %150 {offsets = [0, 64], sizes = [8, 32], strides = [1, 1]} : vector<8x128xf32> to vector<8x32xf32>
    %154 = vector.extract_strided_slice %150 {offsets = [0, 96], sizes = [8, 32], strides = [1, 1]} : vector<8x128xf32> to vector<8x32xf32>
    %155 = arith.mulf %152, %138 : vector<8x32xf32>
    %156 = arith.mulf %151, %153 : vector<8x32xf32>
    %157 = arith.addf %155, %156 : vector<8x32xf32>
    %158 = math.tanh %157 : vector<8x32xf32>
    %159 = arith.mulf %154, %158 : vector<8x32xf32>
    %160 = arith.truncf %159 : vector<8x32xf32> to vector<8x32xbf16>
    %cst_30 = arith.constant dense<0.000000e+00> : vector<8x128xf32>
    %161 = tpu.matmul %160, %24, %cst_30 {dimension_numbers = #tpu.dot_dimension_numbers<[1], [0], [0], [1], [0, 0, 1, 1], [], []>} : vector<8x32xbf16>, vector<32x128xbf16>, vector<8x128xf32> -> vector<8x128xf32>
    %162 = arith.addf %22, %161 : vector<8x128xf32>
    %163 = arith.mulf %162, %8 : vector<8x128xf32>
    %164 = math.tanh %163 : vector<8x128xf32>
    %cst_31 = arith.constant 5.000000e-01 : f32
    %165 = vector.broadcast %cst_31 : f32 to vector<8x128xf32>
    %166 = arith.mulf %165, %164 : vector<8x128xf32>
    %cst_32 = arith.constant 5.000000e-01 : f32
    %167 = vector.broadcast %cst_32 : f32 to vector<8x128xf32>
    %168 = arith.addf %166, %167 : vector<8x128xf32>
    %169 = arith.select %5, %164, %168 : vector<8x128xi1>, vector<8x128xf32>
    %170 = vector.extract_strided_slice %169 {offsets = [0, 0], sizes = [8, 32], strides = [1, 1]} : vector<8x128xf32> to vector<8x32xf32>
    %171 = vector.extract_strided_slice %169 {offsets = [0, 32], sizes = [8, 32], strides = [1, 1]} : vector<8x128xf32> to vector<8x32xf32>
    %172 = vector.extract_strided_slice %169 {offsets = [0, 64], sizes = [8, 32], strides = [1, 1]} : vector<8x128xf32> to vector<8x32xf32>
    %173 = vector.extract_strided_slice %169 {offsets = [0, 96], sizes = [8, 32], strides = [1, 1]} : vector<8x128xf32> to vector<8x32xf32>
    %174 = arith.mulf %171, %157 : vector<8x32xf32>
    %175 = arith.mulf %170, %172 : vector<8x32xf32>
    %176 = arith.addf %174, %175 : vector<8x32xf32>
    %177 = math.tanh %176 : vector<8x32xf32>
    %178 = arith.mulf %173, %177 : vector<8x32xf32>
    %c48 = arith.constant 48 : index
    %c0_33 = arith.constant 0 : index
    %179 = vector.load %arg1[%c48, %c0_33] : memref<88x128xf32, #tpu.memory_space<vmem>>, vector<32x128xf32>
    %cst_34 = arith.constant dense<0.000000e+00> : vector<8x128xf32>
    %180 = tpu.matmul %178, %179, %cst_34 {dimension_numbers = #tpu.dot_dimension_numbers<[1], [0], [0], [1], [0, 0, 1, 1], [], []>} : vector<8x32xf32>, vector<32x128xf32>, vector<8x128xf32> -> vector<8x128xf32>
    %c80 = arith.constant 80 : index
    %c0_35 = arith.constant 0 : index
    %181 = vector.load %arg1[%c80, %c0_35] : memref<88x128xf32, #tpu.memory_space<vmem>>, vector<1x128xf32>
    %182 = vector.broadcast %181 : vector<1x128xf32> to vector<8x128xf32>
    %183 = arith.addf %180, %182 : vector<8x128xf32>
    %184 = vector.extract_strided_slice %183 {offsets = [0, 0], sizes = [2, 1], strides = [1, 1]} : vector<8x128xf32> to vector<2x1xf32>
    %c0_36 = arith.constant 0 : index
    %c0_37 = arith.constant 0 : index
    %185 = vector.load %arg2[%c0_36, %c0_37] : memref<2x1xf32, #tpu.memory_space<vmem>>, vector<2x1xf32>
    tpu.vector_store %arg2[%c0_36, %c0_37], %184 {strides = array<i32>} : memref<2x1xf32, #tpu.memory_space<vmem>>, vector<2x1xf32>,
    return
  }
}

</mosaic_0001>

<bundles_post_ra>
// kernel: tpu_custom_call.1
= control target key start
LH: loop header
LB: loop body
LE: loop exit
PB: predicated region body
PF: predicated region fallthrough
CT: control target
= control target key end

     0   :  { %7 = vsyncpa [#allocation3], 0  ;;  %s1047_s9 = smov [#allocation2]   ;;  %s1267_s0 = inlined_call_operand.vmem [shape: f32[64,8], index: 0, kind: input, shape index: {}]   ;;  %s1268_s1 = inlined_call_operand.hbm [shape: f32[88,128], index: 1, kind: input, shape index: {}]   ;;  %s1269_s2 = inlined_call_operand.vmem [shape: f32[2,1], index: 2, kind: output, shape index: {}]  }
   0x1   :  { %s15_s10 = sshll.u32 %s1047_s9, 4  ;;  %s1023_s13 = scalar_lea.hbm %s1268_s1, 1408  ;;  %s16_s10 = int_to_ptr.vmem [resolvable:$true] %s15_s10 }
   0x2   :  { %p1024_p0 = scmp.ne.s32.totalorder %s1268_s1, %s1023_s13  ;;  %p1027_p1 = scmp.lt.u32.totalorder %s1023_s13, %s1268_s1 }
   0x4   :  { %p1029_p2 = pnand %p1027_p1, %p1024_p0 }
   0x6   :  { %1032 = shalt.err (!%p1029_p2)
}
   0x7   :  { %s1033_s18 = scalar_lea.vmem %s16_s10, 1408  ;;  %p1038_p4 = scmp.lt.s32.totalorder %s16_s10, %s16_s10 }
   0x8   :  { %p1034_p3 = scmp.ne.s32.totalorder %s16_s10, %s1033_s18  ;;  %p1039_p5 = scmp.lt.s32.totalorder %s1033_s18, %s1033_s18 }
   0xa   :  { %p1040_p6 = por %p1039_p5, %p1038_p4 }
   0xc   :  { %p1041_p7 = pnand %p1040_p6, %p1034_p3 }
   0xe   :  { %1044 = shalt.err (!%p1041_p7)
}
   0xf   :  { %s1048_s19 = smov 128   ;;  %s1049_s20 = smov 8  }
  0x10   :  { %21 = dma.hbm_to_vmem [thread:$0]  %s1268_s1, 1408, %s16_s10, [#allocation3], %s1048_s19, %s1048_s19, %s1049_s20  }
  0x11   :  { %1045 = dma.done.wait [#allocation3], 1408  }
  0x12   :  { %1046 = vsyncadd [#allocation3], 4294965888  ;;  %v1050_v0 = vmov 0.0   ;;  %vm1051_vm0 = vmmov 0   ;;  %vm46_vm1 = vcmask 64512   ;;  %v176_v1 = vld [vmem:[#allocation2 + $0x8] sm:$0xff]  ;;  %v26_v11 = vlaneseq }
  0x13   :  { %900 = vmatprep.subr.bf16.mxu1 %v1050_v0  ;;  %904 = vmatprep.mubr.msk.bf16.mxu1 %vm1051_vm0, %v1050_v0  ;;  %v177_v2 = vld [vmem:[#allocation2 + $0x10] sm:$0xff]  ;;  %v40_v3 = vld [vmem:[#allocation2] sm:$0xff]  ;;  %v33_v6 = vld [vmem:[%s1267_s0 + $0x8] sm:$0xff]  ;;  %v1052_v10 = vmov 0   ;;  %v1053_v18 = vmov 0.5   ;;  %s1054_s26 = smov 64  }
  0x14   :  { %v1087_v4 = vpack.c.bf16 %v177_v2, %v176_v1  ;;  %886 = vmatprep.subr.mxu0 %v40_v3  ;;  %v32_v5 = vld [vmem:[%s1267_s0] sm:$0xff]  ;;  %v178_v7 = vld [vmem:[#allocation2 + $0x18] sm:$0xff]  ;;  %v27_v12 = vand.u32 127, %v26_v11  ;;  %v1114_v14 = vld [vmem:[#allocation2 + $0x28] ss:$0 sm:$0xff]  ;;  %s1055_s27 = smov 32  }
  0x15   :  { %887 = vmatpush3.msra.mxu0 %v40_v3  ;;  %888 = vmatprep.mubr.msk.f32.mxu0 %vm46_vm1, %v32_v5  ;;  %v179_v8 = vld [vmem:[#allocation2 + $0x20] sm:$0xff]  ;;  %vm182_vm5 = vcmask 261120   ;;  %v34_v56 = vld [vmem:[%s1267_s0 + $0x10] sm:$0xff]  ;;  %v35_v57 = vld [vmem:[%s1267_s0 + $0x18] sm:$0xff]  ;;  %vm823_vm6 = vcmask 1024  }
  0x16   :  { %901 = vmatpush3.bf16.msra.mxu1 %v1087_v4  ;;  %889 = vmatmul.mubr.msk.f32.vlgmr.msra.gmra.mrb[0].mxu0 %vm46_vm1, %v33_v6  ;;  %v1098_v9 = vpack.c.bf16 %v179_v8, %v178_v7  ;;  %vm28_vm2 = vcmp.ge.s32.totalorder %v27_v12, 64  ;;  %vm29_vm3 = vcmp.lt.s32.totalorder %v27_v12, 96  ;;  %v36_v58 = vld [vmem:[%s1267_s0 + $0x20] sm:$0xff]  ;;  %v37_v59 = vld [vmem:[%s1267_s0 + $0x28] sm:$0xff]  ;;  %v38_v60 = vld [vmem:[%s1267_s0 + $0x30] sm:$0xff] }
  0x17   :  { %902 = vmatprep.subr.bf16.mxu1 %v1050_v0  ;;  %916 = vmatprep.subr.bf16.mxu0 %v1050_v0  ;;  %vm1117_vm4 = vmand %vm28_vm2, %vm29_vm3  ;;  %v39_v61 = vld [vmem:[%s1267_s0 + $0x38] sm:$0xff] }
  0x18   :  { %917 = vmatpush3.bf16.msra.mxu0 %v1087_v4  ;;  %v1123_v19 = vsel %vm1117_vm4, 1.0, %v1053_v18  ;;  %891 = vmatprep.mubr.msk.f32.mxu0 %vm46_vm1, %v34_v56 }
  0x19   :  { %918 = vmatprep.subr.bf16.mxu0 %v1050_v0 }
  0x1a   :  { %903 = vmatpush3.bf16.msra.mxu1 %v1098_v9  ;;  %892 = vmatmul.mubr.msk.f32.gmra.mrb[2].mxu0 %vm46_vm1, %v35_v57 }
  0x1b   :  { %908 = vmatprep.subr.bf16.mxu1 %v1050_v0  ;;  %894 = vmatprep.mubr.msk.f32.mxu0 %vm46_vm1, %v36_v58 }
  0x1c   :  { %919 = vmatpush3.bf16.msra.mxu0 %v1098_v9 }
  0x1d   :  { %905 = vmatmul.mubr.bf16.vlgmr.msra.gmra.mrb[0].mxu1 %v1052_v10  ;;  %932 = vmatprep.subr.bf16.mxu0 %v1050_v0 }
  0x1e   :  { %909 = vmatpush3.bf16.msra.mxu1 %v1087_v4  ;;  %912 = vmatprep.mubr.msk.bf16.mxu1 %vm1051_vm0, %v1050_v0 }
  0x1f   :  { %910 = vmatprep.subr.bf16.mxu1 %v1050_v0  ;;  %895 = vmatmul.mubr.msk.f32.gmra.mrb[4].mxu0 %vm46_vm1, %v37_v59 }
  0x20   :  { %897 = vmatprep.mubr.msk.f32.mxu0 %vm46_vm1, %v38_v60 }
  0x22   :  { %911 = vmatpush3.bf16.msra.mxu1 %v1098_v9 }
  0x23   :  { %924 = vmatprep.subr.bf16.mxu1 %v1050_v0  ;;  %898 = vmatmul.mubr.msk.f32.gmra.mrb[6].mxu0 %vm46_vm1, %v39_v61 }
  0x24   :  { %920 = vmatprep.mubr.msk.bf16.mxu0 %vm1051_vm0, %v1050_v0 }
  0xe9   :  { %v890_v13 = vpop.f32.mrb[0].mxu0 }
  0xea   :  { %v137_v15 = vpop.f32.mrb[1].mxu0  ;;  %v143_v40 = vadd.f32 %v890_v13, %v1114_v14 }
  0xeb   :  { %v138_v16 = vadd.f32 %v1114_v14, %v137_v15 }
  0xed   :  { %v893_v3 = vpop.f32.mrb[2].mxu0 }
  0xee   :  { %v147_v5 = vpop.f32.mrb[3].mxu0 }
  0xef   :  { %v148_v12 = vadd.f32 %v1114_v14, %v147_v5 }
  0xf0   :  { %v220_v20 = vpop.f32.mrb[0].mxu1 }
  0xf1   :  { %v226_v21 = vadd.f32 %v220_v20, %v138_v16  ;;  %v906_v22 = vpop.f32.mrb[1].mxu1 }
  0xf2   :  { %v223_v23 = vpop.f32.mrb[2].mxu1  ;;  %v1173_v6 = vpop.f32.mrb[4].mxu0 }
  0xf3   :  { %v227_v24 = vmul.f32 %v226_v21, %v1123_v19  ;;  %v907_v25 = vpop.f32.mrb[3].mxu1  ;;  %v1175_v7 = vpop.f32.mrb[5].mxu0 }
  0xf4   :  { %v158_v57 = vadd.f32 %v1114_v14, %v1175_v7 }
  0xf5   :  { %991 = vtanh.f32 %v227_v24 }
  0xf6   :  { %v1177_v8 = vpop.f32.mrb[6].mxu0 }
  0xf7   :  { %v1179_v10 = vpop.f32.mrb[7].mxu0 }
  0xff   :  { %v992_v26 = vpop.eup %991 }
 0x100   :  { %v229_v27 = vmul.f32 0.5, %v992_v26 }
 0x102   :  { %v230_v28 = vadd.f32 0.5, %v229_v27 }
 0x104   :  { %v231_v29 = vsel %vm1117_vm4, %v992_v26, %v230_v28 }
 0x105   :  { %234 = vrot.lane.b32.xlu0 %v231_v29, %s1054_s26  ;;  %v232_v32 = vmul.f32 0.0, %v231_v29 }
 0x177   :  { %v235_v30 = vpop.permute.xlu0 %234 }
 0x178   :  { %v237_v31 = vmul.f32 %v235_v30, %v231_v29 }
 0x17a   :  { %239 = vrot.lane.b32.xlu0 %v237_v31, %s1055_s27 }
 0x1ec   :  { %v240_v33 = vpop.permute.xlu0 %239 }
 0x1ed   :  { %v242_v34 = vadd.f32 %v240_v33, %v232_v32 }
 0x1ef   :  { %993 = vtanh.f32 %v242_v34 }
 0x1f9   :  { %v994_v35 = vpop.eup %993 }
 0x1fa   :  { %245 = vrot.lane.b32.xlu1 %v994_v35, %s1054_s26 }
 0x26c   :  { %v246_v36 = vpop.permute.xlu1 %245 }
 0x26d   :  { %v248_v37 = vmul.f32 %v246_v36, %v231_v29  ;;  %v153_v36 = vadd.f32 %v893_v3, %v1114_v14 }
 0x26f   :  { %v249_v38 = vpack.c.bf16 %v248_v37, %v248_v37 }
 0x271   :  { %251 = vrot.lane.b32.xlu1 %v249_v38, %s1055_s27 }
 0x2e3   :  { %v252_v39 = vpop.permute.xlu1 %251 }
 0x2e4   :  { %913 = vmatmul.mubr.msk.bf16.vlgmr.msra.gmra.mrb[4].mxu1 %vm182_vm5, %v252_v39 }
 0x2e5   :  { %925 = vmatpush3.bf16.msra.mxu1 %v1087_v4  ;;  %928 = vmatprep.mubr.msk.bf16.mxu1 %vm1051_vm0, %v1050_v0 }
 0x2e6   :  { %926 = vmatprep.subr.bf16.mxu1 %v1050_v0 }
 0x2e9   :  { %927 = vmatpush3.bf16.msra.mxu1 %v1098_v9 }
 0x2ea   :  { %940 = vmatprep.subr.bf16.mxu1 %v1050_v0 }
 0x3b7   :  { %v290_v41 = vpop.f32.mrb[4].mxu1 }
 0x3b8   :  { %v296_v42 = vadd.f32 %v290_v41, %v143_v40  ;;  %v914_v43 = vpop.f32.mrb[5].mxu1 }
 0x3b9   :  { %v293_v44 = vpop.f32.mrb[6].mxu1 }
 0x3ba   :  { %v297_v45 = vmul.f32 %v296_v42, %v1123_v19  ;;  %v915_v46 = vpop.f32.mrb[7].mxu1 }
 0x3bc   :  { %995 = vtanh.f32 %v297_v45 }
 0x3c6   :  { %v996_v47 = vpop.eup %995 }
 0x3c7   :  { %v299_v48 = vmul.f32 0.5, %v996_v47 }
 0x3c9   :  { %v300_v49 = vadd.f32 0.5, %v299_v48 }
 0x3cb   :  { %v301_v50 = vsel %vm1117_vm4, %v996_v47, %v300_v49 }
 0x3cc   :  { %304 = vrot.lane.b32.xlu0 %v301_v50, %s1054_s26  ;;  %v302_v53 = vmul.f32 %v301_v50, %v242_v34 }
 0x43e   :  { %v305_v51 = vpop.permute.xlu0 %304 }
 0x43f   :  { %v307_v52 = vmul.f32 %v305_v51, %v301_v50 }
 0x441   :  { %309 = vrot.lane.b32.xlu1 %v307_v52, %s1055_s27 }
 0x4b3   :  { %v310_v54 = vpop.permute.xlu1 %309 }
 0x4b4   :  { %v312_v55 = vadd.f32 %v310_v54, %v302_v53 }
 0x4b6   :  { %997 = vtanh.f32 %v312_v55 }
 0x4c0   :  { %v998_v62 = vpop.eup %997 }
 0x4c1   :  { %315 = vrot.lane.b32.xlu0 %v998_v62, %s1054_s26 }
 0x533   :  { %v316_v63 = vpop.permute.xlu0 %315 }
 0x534   :  { %v318_v1 = vmul.f32 %v316_v63, %v301_v50 }
 0x536   :  { %v319_v2 = vpack.c.bf16 %v318_v1, %v318_v1 }
 0x538   :  { %321 = vrot.lane.b32.xlu1 %v319_v2, %s1055_s27 }
 0x5aa   :  { %v322_v11 = vpop.permute.xlu1 %321 }
 0x5ab   :  { %921 = vmatmul.mubr.msk.bf16.vlgmr.msra.gmra.mrb[8].mxu0 %vm182_vm5, %v322_v11 }
 0x5ac   :  { %933 = vmatpush3.bf16.msra.mxu0 %v1087_v4  ;;  %936 = vmatprep.mubr.msk.bf16.mxu0 %vm1051_vm0, %v1050_v0 }
 0x5ad   :  { %934 = vmatprep.subr.bf16.mxu0 %v1050_v0 }
 0x5b0   :  { %935 = vmatpush3.bf16.msra.mxu0 %v1098_v9 }
 0x5b1   :  { %948 = vmatprep.subr.bf16.mxu0 %v1050_v0 }
 0x67e   :  { %v360_v13 = vpop.f32.mrb[8].mxu0 }
 0x67f   :  { %v366_v15 = vadd.f32 %v360_v13, %v148_v12  ;;  %v922_v16 = vpop.f32.mrb[9].mxu0 }
 0x680   :  { %v363_v18 = vpop.f32.mrb[10].mxu0 }
 0x681   :  { %v367_v20 = vmul.f32 %v366_v15, %v1123_v19  ;;  %v923_v21 = vpop.f32.mrb[11].mxu0 }
 0x683   :  { %999 = vtanh.f32 %v367_v20 }
 0x68d   :  { %v1000_v22 = vpop.eup %999 }
 0x68e   :  { %v369_v23 = vmul.f32 0.5, %v1000_v22 }
 0x690   :  { %v370_v24 = vadd.f32 0.5, %v369_v23  ;;  %v163_v23 = vadd.f32 %v1173_v6, %v1114_v14 }
 0x692   :  { %v371_v25 = vsel %vm1117_vm4, %v1000_v22, %v370_v24 }
 0x693   :  { %374 = vrot.lane.b32.xlu0 %v371_v25, %s1054_s26  ;;  %v372_v28 = vmul.f32 %v371_v25, %v312_v55 }
 0x705   :  { %v375_v26 = vpop.permute.xlu0 %374 }
 0x706   :  { %v377_v27 = vmul.f32 %v375_v26, %v371_v25 }
 0x708   :  { %379 = vrot.lane.b32.xlu1 %v377_v27, %s1055_s27 }
 0x77a   :  { %v380_v29 = vpop.permute.xlu1 %379 }
 0x77b   :  { %v382_v30 = vadd.f32 %v380_v29, %v372_v28 }
 0x77d   :  { %1001 = vtanh.f32 %v382_v30 }
 0x787   :  { %v1002_v31 = vpop.eup %1001 }
 0x788   :  { %385 = vrot.lane.b32.xlu0 %v1002_v31, %s1054_s26 }
 0x7fa   :  { %v386_v32 = vpop.permute.xlu0 %385 }
 0x7fb   :  { %v388_v33 = vmul.f32 %v386_v32, %v371_v25 }
 0x7fd   :  { %v389_v34 = vpack.c.bf16 %v388_v33, %v388_v33 }
 0x7ff   :  { %391 = vrot.lane.b32.xlu1 %v389_v34, %s1055_s27 }
 0x871   :  { %v392_v35 = vpop.permute.xlu1 %391 }
 0x872   :  { %929 = vmatmul.mubr.msk.bf16.vlgmr.msra.gmra.mrb[8].mxu1 %vm182_vm5, %v392_v35 }
 0x873   :  { %941 = vmatpush3.bf16.msra.mxu1 %v1087_v4  ;;  %944 = vmatprep.mubr.msk.bf16.mxu1 %vm1051_vm0, %v1050_v0 }
 0x874   :  { %942 = vmatprep.subr.bf16.mxu1 %v1050_v0 }
 0x877   :  { %943 = vmatpush3.bf16.msra.mxu1 %v1098_v9 }
 0x878   :  { %956 = vmatprep.subr.bf16.mxu1 %v1050_v0 }
 0x945   :  { %v430_v37 = vpop.f32.mrb[8].mxu1 }
 0x946   :  { %v436_v38 = vadd.f32 %v430_v37, %v153_v36  ;;  %v930_v39 = vpop.f32.mrb[9].mxu1 }
 0x947   :  { %v433_v40 = vpop.f32.mrb[10].mxu1 }
 0x948   :  { %v437_v41 = vmul.f32 %v436_v38, %v1123_v19  ;;  %v931_v42 = vpop.f32.mrb[11].mxu1 }
 0x94a   :  { %1003 = vtanh.f32 %v437_v41  ;;  %v168_v41 = vadd.f32 %v1114_v14, %v1179_v10 }
 0x954   :  { %v1004_v43 = vpop.eup %1003 }
 0x955   :  { %v439_v44 = vmul.f32 0.5, %v1004_v43 }
 0x957   :  { %v440_v45 = vadd.f32 0.5, %v439_v44 }
 0x959   :  { %v441_v46 = vsel %vm1117_vm4, %v1004_v43, %v440_v45 }
 0x95a   :  { %444 = vrot.lane.b32.xlu0 %v441_v46, %s1054_s26  ;;  %v442_v49 = vmul.f32 %v441_v46, %v382_v30 }
 0x9cc   :  { %v445_v47 = vpop.permute.xlu0 %444 }
 0x9cd   :  { %v447_v48 = vmul.f32 %v445_v47, %v441_v46 }
 0x9cf   :  { %449 = vrot.lane.b32.xlu1 %v447_v48, %s1055_s27 }
 0xa41   :  { %v450_v50 = vpop.permute.xlu1 %449 }
 0xa42   :  { %v452_v51 = vadd.f32 %v450_v50, %v442_v49 }
 0xa44   :  { %1005 = vtanh.f32 %v452_v51 }
 0xa4e   :  { %v1006_v52 = vpop.eup %1005 }
 0xa4f   :  { %455 = vrot.lane.b32.xlu0 %v1006_v52, %s1054_s26 }
 0xac1   :  { %v456_v53 = vpop.permute.xlu0 %455 }
 0xac2   :  { %v458_v54 = vmul.f32 %v456_v53, %v441_v46 }
 0xac4   :  { %v459_v55 = vpack.c.bf16 %v458_v54, %v458_v54 }
 0xac6   :  { %461 = vrot.lane.b32.xlu1 %v459_v55, %s1055_s27 }
 0xb38   :  { %v462_v56 = vpop.permute.xlu1 %461 }
 0xb39   :  { %937 = vmatmul.mubr.msk.bf16.vlgmr.msra.gmra.mrb[12].mxu0 %vm182_vm5, %v462_v56 }
 0xb3a   :  { %949 = vmatpush3.bf16.msra.mxu0 %v1087_v4  ;;  %952 = vmatprep.mubr.msk.bf16.mxu0 %vm1051_vm0, %v1050_v0 }
 0xb3b   :  { %950 = vmatprep.subr.bf16.mxu0 %v1050_v0 }
 0xb3e   :  { %951 = vmatpush3.bf16.msra.mxu0 %v1098_v9 }
 0xc0c   :  { %v500_v58 = vpop.f32.mrb[12].mxu0 }
 0xc0d   :  { %v506_v59 = vadd.f32 %v500_v58, %v158_v57  ;;  %v938_v60 = vpop.f32.mrb[13].mxu0 }
 0xc0e   :  { %v503_v61 = vpop.f32.mrb[14].mxu0  ;;  %v173_v60 = vadd.f32 %v1177_v8, %v1114_v14 }
 0xc0f   :  { %v507_v62 = vmul.f32 %v506_v59, %v1123_v19  ;;  %v939_v63 = vpop.f32.mrb[15].mxu0 }
 0xc11   :  { %1007 = vtanh.f32 %v507_v62 }
 0xc1b   :  { %v1008_v1 = vpop.eup %1007 }
 0xc1c   :  { %v509_v2 = vmul.f32 0.5, %v1008_v1 }
 0xc1e   :  { %v510_v3 = vadd.f32 0.5, %v509_v2 }
 0xc20   :  { %v511_v5 = vsel %vm1117_vm4, %v1008_v1, %v510_v3 }
 0xc21   :  { %514 = vrot.lane.b32.xlu0 %v511_v5, %s1054_s26  ;;  %v512_v7 = vmul.f32 %v511_v5, %v452_v51 }
 0xc93   :  { %v515_v11 = vpop.permute.xlu0 %514 }
 0xc94   :  { %v517_v12 = vmul.f32 %v515_v11, %v511_v5 }
 0xc96   :  { %519 = vrot.lane.b32.xlu1 %v517_v12, %s1055_s27 }
 0xd08   :  { %v520_v13 = vpop.permute.xlu1 %519 }
 0xd09   :  { %v522_v15 = vadd.f32 %v520_v13, %v512_v7 }
 0xd0b   :  { %1009 = vtanh.f32 %v522_v15 }
 0xd15   :  { %v1010_v16 = vpop.eup %1009 }
 0xd16   :  { %525 = vrot.lane.b32.xlu0 %v1010_v16, %s1054_s26 }
 0xd88   :  { %v526_v18 = vpop.permute.xlu0 %525 }
 0xd89   :  { %v528_v20 = vmul.f32 %v526_v18, %v511_v5  ;;  %v739_v18 = vld [vmem:[#allocation2 + $0x30] sm:$0xff] }
 0xd8b   :  { %v529_v21 = vpack.c.bf16 %v528_v20, %v528_v20  ;;  %v741_v20 = vld [vmem:[#allocation2 + $0x40] sm:$0xff] }
 0xd8d   :  { %531 = vrot.lane.b32.xlu1 %v529_v21, %s1055_s27  ;;  %v1056_v21 = vmov 0.0|0.0  }
 0xd8e   :  { %975 = vmatprep.subr.bf16.mxu0 %v1056_v21 }
 0xdff   :  { %v532_v22 = vpop.permute.xlu1 %531 }
 0xe00   :  { %945 = vmatmul.mubr.msk.bf16.vlgmr.msra.gmra.mrb[12].mxu1 %vm182_vm5, %v532_v22 }
 0xe01   :  { %957 = vmatpush3.bf16.msra.mxu1 %v1087_v4  ;;  %960 = vmatprep.mubr.msk.bf16.mxu1 %vm1051_vm0, %v1050_v0 }
 0xe02   :  { %958 = vmatprep.subr.bf16.mxu1 %v1050_v0 }
 0xe05   :  { %959 = vmatpush3.bf16.msra.mxu1 %v1098_v9 }
 0xed3   :  { %v570_v24 = vpop.f32.mrb[12].mxu1 }
 0xed4   :  { %v576_v25 = vadd.f32 %v570_v24, %v163_v23  ;;  %v946_v26 = vpop.f32.mrb[13].mxu1  ;;  %v742_v23 = vld [vmem:[#allocation2 + $0x48] sm:$0xff] }
 0xed5   :  { %v573_v27 = vpop.f32.mrb[14].mxu1  ;;  %v979_v17 = vpack.c.bf16 %v742_v23, %v741_v20 }
 0xed6   :  { %v577_v28 = vmul.f32 %v576_v25, %v1123_v19  ;;  %v947_v29 = vpop.f32.mrb[15].mxu1 }
 0xed8   :  { %1011 = vtanh.f32 %v577_v28  ;;  %v846_v28 = vld [vmem:[#allocation2 + $0x50] ss:$0 sm:$0xff] }
 0xee2   :  { %v1012_v30 = vpop.eup %1011 }
 0xee3   :  { %v579_v4 = vmul.f32 0.5, %v1012_v30 }
 0xee5   :  { %v580_v31 = vadd.f32 0.5, %v579_v4 }
 0xee7   :  { %v581_v32 = vsel %vm1117_vm4, %v1012_v30, %v580_v31 }
 0xee8   :  { %584 = vrot.lane.b32.xlu0 %v581_v32, %s1054_s26  ;;  %v582_v6 = vmul.f32 %v581_v32, %v522_v15 }
 0xf5a   :  { %v585_v9 = vpop.permute.xlu0 %584 }
 0xf5b   :  { %v587_v33 = vmul.f32 %v585_v9, %v581_v32 }
 0xf5d   :  { %589 = vrot.lane.b32.xlu1 %v587_v33, %s1055_s27 }
 0xfcf   :  { %v590_v34 = vpop.permute.xlu1 %589 }
 0xfd0   :  { %v592_v35 = vadd.f32 %v590_v34, %v582_v6 }
 0xfd2   :  { %1013 = vtanh.f32 %v592_v35 }
 0xfdc   :  { %v1014_v36 = vpop.eup %1013 }
 0xfdd   :  { %595 = vrot.lane.b32.xlu0 %v1014_v36, %s1054_s26 }
0x104f   :  { %v596_v37 = vpop.permute.xlu0 %595 }
0x1050   :  { %v598_v38 = vmul.f32 %v596_v37, %v581_v32 }
0x1052   :  { %v599_v39 = vpack.c.bf16 %v598_v38, %v598_v38 }
0x1054   :  { %601 = vrot.lane.b32.xlu1 %v599_v39, %s1055_s27 }
0x10c6   :  { %v602_v40 = vpop.permute.xlu1 %601 }
0x10c7   :  { %953 = vmatmul.mubr.msk.bf16.vlgmr.msra.gmra.mrb[16].mxu0 %vm182_vm5, %v602_v40 }
0x10c8   :  { %972 = vmatprep.mubr.msk.f32.mxu0 %vm1051_vm0, %v1050_v0 }
0x119a   :  { %v640_v42 = vpop.f32.mrb[16].mxu0 }
0x119b   :  { %v646_v43 = vadd.f32 %v640_v42, %v168_v41  ;;  %v954_v44 = vpop.f32.mrb[17].mxu0 }
0x119c   :  { %v643_v45 = vpop.f32.mrb[18].mxu0 }
0x119d   :  { %v647_v46 = vmul.f32 %v646_v43, %v1123_v19  ;;  %v955_v47 = vpop.f32.mrb[19].mxu0 }
0x119f   :  { %1015 = vtanh.f32 %v647_v46 }
0x11a9   :  { %v1016_v48 = vpop.eup %1015 }
0x11aa   :  { %v649_v49 = vmul.f32 0.5, %v1016_v48 }
0x11ac   :  { %v650_v50 = vadd.f32 0.5, %v649_v49 }
0x11ae   :  { %v651_v51 = vsel %vm1117_vm4, %v1016_v48, %v650_v50 }
0x11af   :  { %654 = vrot.lane.b32.xlu0 %v651_v51, %s1054_s26  ;;  %v652_v10 = vmul.f32 %v651_v51, %v592_v35 }
0x1221   :  { %v655_v0 = vpop.permute.xlu0 %654 }
0x1222   :  { %v657_v52 = vmul.f32 %v655_v0, %v651_v51 }
0x1224   :  { %659 = vrot.lane.b32.xlu1 %v657_v52, %s1055_s27 }
0x1296   :  { %v660_v53 = vpop.permute.xlu1 %659 }
0x1297   :  { %v662_v54 = vadd.f32 %v660_v53, %v652_v10 }
0x1299   :  { %1017 = vtanh.f32 %v662_v54 }
0x12a3   :  { %v1018_v55 = vpop.eup %1017 }
0x12a4   :  { %665 = vrot.lane.b32.xlu0 %v1018_v55, %s1054_s26 }
0x1316   :  { %v666_v56 = vpop.permute.xlu0 %665 }
0x1317   :  { %v668_v57 = vmul.f32 %v666_v56, %v651_v51 }
0x1319   :  { %v669_v58 = vpack.c.bf16 %v668_v57, %v668_v57 }
0x131b   :  { %671 = vrot.lane.b32.xlu1 %v669_v58, %s1055_s27 }
0x138d   :  { %v672_v59 = vpop.permute.xlu1 %671 }
0x138e   :  { %961 = vmatmul.mubr.msk.bf16.vlgmr.msra.gmra.mrb[16].mxu1 %vm182_vm5, %v672_v59 }
0x1461   :  { %v710_v61 = vpop.f32.mrb[16].mxu1 }
0x1462   :  { %v716_v62 = vadd.f32 %v710_v61, %v173_v60  ;;  %v962_v63 = vpop.f32.mrb[17].mxu1 }
0x1463   :  { %v713_v1 = vpop.f32.mrb[18].mxu1 }
0x1464   :  { %v717_v2 = vmul.f32 %v716_v62, %v1123_v19  ;;  %v963_v3 = vpop.f32.mrb[19].mxu1  ;;  %v740_v19 = vld [vmem:[#allocation2 + $0x38] sm:$0xff] }
0x1465   :  { %v976_v22 = vpack.c.bf16 %v740_v19, %v739_v18 }
0x1466   :  { %1019 = vtanh.f32 %v717_v2 }
0x1467   :  { %977 = vmatpush3.bf16.msra.mxu0 %v976_v22 }
0x1468   :  { %978 = vmatprep.subr.bf16.mxu0 %v1056_v21 }
0x146b   :  { %980 = vmatpush3.bf16.msra.mxu0 %v979_v17 }
0x1470   :  { %v1020_v5 = vpop.eup %1019 }
0x1471   :  { %v719_v11 = vmul.f32 0.5, %v1020_v5 }
0x1473   :  { %v720_v12 = vadd.f32 0.5, %v719_v11 }
0x1475   :  { %v721_v7 = vsel %vm1117_vm4, %v1020_v5, %v720_v12 }
0x1476   :  { %724 = vrot.lane.b32.xlu0 %v721_v7, %s1054_s26  ;;  %v722_v14 = vmul.f32 %v721_v7, %v662_v54 }
0x14e8   :  { %v725_v13 = vpop.permute.xlu0 %724 }
0x14e9   :  { %v727_v15 = vmul.f32 %v725_v13, %v721_v7 }
0x14eb   :  { %729 = vrot.lane.b32.xlu1 %v727_v15, %s1055_s27 }
0x155d   :  { %v730_v8 = vpop.permute.xlu1 %729 }
0x155e   :  { %v732_v16 = vadd.f32 %v730_v8, %v722_v14 }
0x1560   :  { %1021 = vtanh.f32 %v732_v16 }
0x156a   :  { %v1022_v24 = vpop.eup %1021 }
0x156b   :  { %735 = vrot.lane.b32.xlu0 %v1022_v24, %s1054_s26 }
0x15dd   :  { %v736_v25 = vpop.permute.xlu0 %735 }
0x15de   :  { %v738_v26 = vmul.f32 %v736_v25, %v721_v7 }
0x15e0   :  { %749 = vrot.lane.b32.xlu1 %v738_v26, %s1055_s27 }
0x1652   :  { %v750_v27 = vpop.permute.xlu1 %749 }
0x1653   :  { %973 = vmatmul.mubr.msk.f32.vlgmr.msra.gmra.mrb[20].mxu0 %vm182_vm5, %v750_v27 }
0x1726   :  { %v819_v29 = vpop.f32.mrb[20].mxu0 }
0x1727   :  { %v820_v30 = vadd.f32 %v846_v28, %v819_v29  ;;  %v974_v4 = vpop.f32.mrb[21].mxu0 }
0x1729   :  { %824 = vst.msk [vmem:[%s1269_s2] sm:$0x3] %vm823_vm6, %v820_v30 }
0x172a   :  { %829 = vsyncpa [#allocation3], 1 }

</bundles_post_ra>
